<compile_context>
chip_gen: v5e
topology: v5e:2x2
jax: 0.10.0
libtpu: 0.0.40
codegen_flags: <defaults>
</compile_context>

<pallas_src>
import functools

import jax
import jax.numpy as jnp
from jax.experimental import pallas as pl
from jax.experimental.pallas import tpu as pltpu

BN_EPS = 1e-5


# --------------------------------------------------------------------------- tiling helpers
def _round_up(x, m):
    return ((x + m - 1) // m) * m


_VMEM_WARNED = [False]


def _vmem_capacity_bytes():
    try:
        return int(pltpu.get_tpu_info().vmem_capacity_bytes)
    except Exception:
        if not _VMEM_WARNED[0]:
            print("WARNING: pltpu.get_tpu_info() unavailable; planning for 64 MiB VMEM")
            _VMEM_WARNED[0] = True
        return 64 * 1024 * 1024  # conservative (v7x per-TensorCore VMEM)


def _compiler_params():
    cap = _vmem_capacity_bytes()
    return pltpu.CompilerParams(
        dimension_semantics=("parallel", "parallel"),
        vmem_limit_bytes=int(min(cap * 3 // 4, 100 * 1024 * 1024)),
    )


def _plan_row_tile(n, h, w, c_in, c_out):
    """Pick TH (low-res rows per grid step) and padded spatial sizes."""
    c_mid = c_in // 4
    wp = _round_up(max(w, 1), 8)                       # sublane-aligned width
    # generous per-low-res-pixel VMEM bytes: dbl-buffered bf16 in/out + f32/bf16
    # in-kernel intermediates (conv1 output + 4 taps, deconv acc, conv2 acc).
    per_px = (2 * c_in * 2) + (2 * 4 * c_out * 2) \
        + 10 * c_mid * 4 + 3 * (4 * c_mid) * 4 + (4 * c_out) * 4
    fixed = 4 * (c_in * c_mid + 16 * c_mid * c_mid + 16 * c_mid * c_out) \
        + 8 * (c_mid + 4 * c_mid + 4 * c_out) + (2 << 20)
    budget = int(_vmem_capacity_bytes() * 0.6) - fixed
    th = max(1, budget // max(per_px * wp, 1))
    th = min(th, h, max(1, 1024 // wp))                # >1K-row tiles do not help BW
    if n * h >= 4:                                     # >=4 steps: 2 per v7x TensorCore
        th = min(th, max(1, (n * h) // 4))
    ht = pl.cdiv(h, th)
    return th, ht, ht * th, wp


# --------------------------------------------------------------------------- kernel
def _decoder_block_kernel(xm_ref, xh_ref, w1_ref, b1_ref, wd_ref, bd_ref,
                          w2_ref, b2_ref, o_ref, *, th, wp, h, w, c_mid):
    # xm_ref: (th*wp, c_in) bf16 tile rows;  xh_ref: (wp, c_in) bf16 bottom halo row
    # w1_ref: (c_in, c_mid)   bf16, BN scale folded    b1_ref: (1, c_mid)   f32 shift
    # wd_ref: (4, c_mid, 4*c_mid) bf16 per-tap phase weights, BN scale folded
    # w2_ref: (4*c_mid, 4*c_out)  bf16 block-diag conv2, BN scale folded
    i = pl.program_id(1)
    n_main = th * wp

    # conv1 (1x1) + BN + ReLU on the tile rows and on the halo row.
    ym = jnp.dot(xm_ref[...], w1_ref[...], preferred_element_type=jnp.float32)
    ym = jnp.maximum(ym + b1_ref[...], 0.0)
    yh = jnp.dot(xh_ref[...], w1_ref[...], preferred_element_type=jnp.float32)
    yh = jnp.maximum(yh + b1_ref[...], 0.0)

    # zero out conv1 outputs that lie outside the real image (transposed-conv edges).
    lrow = jax.lax.broadcasted_iota(jnp.int32, (th, wp, 1), 0).reshape(n_main, 1)
    col = jax.lax.broadcasted_iota(jnp.int32, (th, wp, 1), 1).reshape(n_main, 1)
    ym = jnp.where(i * th + lrow < h, ym, 0.0)
    yh = jnp.where((i + 1) * th < h, yh, 0.0)

    # flattened (row-major) conv1 output incl. halo + 8 zero rows so the shifted
    # slices below stay in bounds (their out-of-image elements are masked anyway).
    y_all = jnp.concatenate([ym, yh, jnp.zeros((8, c_mid), jnp.float32)], axis=0)

    col_ok = col < (w - 1)
    t00 = ym
    t01 = jnp.where(col_ok, y_all[1:n_main + 1], 0.0)
    t10 = y_all[wp:n_main + wp]
    t11 = jnp.where(col_ok, y_all[wp + 1:n_main + wp + 1], 0.0)

    # stride-2 transposed conv (4 sub-pixel phases) + BN + ReLU: accumulate the 4
    # tap matmuls against the per-tap (c_mid, 4*c_mid) phase weights.
    d = jnp.dot(t00.astype(jnp.bfloat16), wd_ref[0], preferred_element_type=jnp.float32)
    d += jnp.dot(t01.astype(jnp.bfloat16), wd_ref[1], preferred_element_type=jnp.float32)
    d += jnp.dot(t10.astype(jnp.bfloat16), wd_ref[2], preferred_element_type=jnp.float32)
    d += jnp.dot(t11.astype(jnp.bfloat16), wd_ref[3], preferred_element_type=jnp.float32)
    d = jnp.maximum(d + bd_ref[...], 0.0)

    # conv2 (1x1) + BN + ReLU on all 4 phases (block-diagonal weight), bf16 store.
    o = jnp.dot(d.astype(jnp.bfloat16), w2_ref[...], preferred_element_type=jnp.float32)
    o_ref[...] = jnp.maximum(o + b2_ref[...], 0.0).astype(o_ref.dtype)


# --------------------------------------------------------------------------- kernel wrapper
def _fused_decoder_call(x2d, p, *, n, h, w, th, ht, h_pad, wp, c_in, c_mid, c_out):
    co4 = 4 * c_out
    cm4 = 4 * c_mid
    kernel = functools.partial(_decoder_block_kernel, th=th, wp=wp, h=h, w=w, c_mid=c_mid)

    px = n * h_pad * wp
    weight_bytes = 2 * (c_in * c_mid + 4 * c_mid * cm4 + cm4 * co4)
    flops = 2 * px * (c_in * c_mid + cm4 * cm4 + cm4 * co4)
    bytes_acc = int(px * (c_in * 2 * (1.0 + 1.0 / th) + co4 * 2) + weight_bytes)

    return pl.pallas_call(
        kernel,
        out_shape=jax.ShapeDtypeStruct((px, co4), jnp.bfloat16),
        grid=(n, ht),
        in_specs=[
            # tile of TH low-res rows (flattened to TH*Wp rows of C_in channels)
            pl.BlockSpec((th * wp, c_in), lambda b, i: (b * ht + i, 0)),
            # 1-row bottom halo (clamped; masked to zero in-kernel when out of image)
            pl.BlockSpec((wp, c_in),
                         lambda b, i: (b * h_pad + jnp.minimum((i + 1) * th, h_pad - 1), 0)),
            pl.BlockSpec((c_in, c_mid), lambda b, i: (0, 0)),
            pl.BlockSpec((1, c_mid), lambda b, i: (0, 0)),
            pl.BlockSpec((4, c_mid, cm4), lambda b, i: (0, 0, 0)),
            pl.BlockSpec((1, cm4), lambda b, i: (0, 0)),
            pl.BlockSpec((cm4, co4), lambda b, i: (0, 0)),
            pl.BlockSpec((1, co4), lambda b, i: (0, 0)),
        ],
        out_specs=pl.BlockSpec((th * wp, co4), lambda b, i: (b * ht + i, 0)),
        compiler_params=_compiler_params(),
        cost_estimate=pl.CostEstimate(flops=int(flops), transcendentals=0,
                                      bytes_accessed=bytes_acc),
    )(x2d, x2d, p["w1k"], p["b1k"], p["wdk"], p["bdk"], p["w2k"], p["b2k"])


# --------------------------------------------------------------------------- params
def init_params(key, c_in, c_out):
    assert c_in % 4 == 0
    c_mid = c_in // 4
    keys = iter(jax.random.split(key, 32))

    def conv_w(shape, fan_in):
        return jax.random.normal(next(keys), shape, jnp.float32) / jnp.sqrt(float(fan_in))

    def bn_params(c):
        gamma = jax.random.uniform(next(keys), (c,), jnp.float32, minval=0.5, maxval=1.5)
        beta = 0.1 * jax.random.normal(next(keys), (c,), jnp.float32)
        mean = 0.1 * jax.random.normal(next(keys), (c,), jnp.float32)
        var = jax.random.uniform(next(keys), (c,), jnp.float32, minval=0.5, maxval=1.5)
        return gamma, beta, mean, var

    def fold(gamma, beta, mean, var, conv_bias):
        scale = gamma / jnp.sqrt(var + BN_EPS)
        shift = beta + (conv_bias - mean) * scale
        return scale, shift

    # conv1: Conv2d(c_in -> c_mid, k=1, bias=True) + BN
    w1_oihw = conv_w((c_mid, c_in, 1, 1), c_in)
    b1 = 0.1 * jax.random.normal(next(keys), (c_mid,), jnp.float32)
    scale1, shift1 = fold(*bn_params(c_mid), b1)
    w1 = jnp.transpose(w1_oihw[:, :, 0, 0], (1, 0))            # (c_in, c_mid)

    # deconv: ConvTranspose2d(c_mid -> c_mid, k=3, s=2, p=1, bias=True) + BN
    wt = conv_w((c_mid, c_mid, 3, 3), c_mid * 9)               # PyTorch (in, out, kh, kw)
    bd = 0.1 * jax.random.normal(next(keys), (c_mid,), jnp.float32)
    scale_d, shift_d = fold(*bn_params(c_mid), bd)
    w_deq = jnp.transpose(jnp.flip(wt, axis=(2, 3)), (2, 3, 0, 1))  # HWIO for reference

    # conv2: Conv2d(c_mid -> c_out, k=1, bias=True) + BN
    w2_oihw = conv_w((c_out, c_mid, 1, 1), c_mid)
    b2 = 0.1 * jax.random.normal(next(keys), (c_out,), jnp.float32)
    scale2, shift2 = fold(*bn_params(c_out), b2)
    w2 = jnp.transpose(w2_oihw[:, :, 0, 0], (1, 0))            # (c_mid, c_out)

    # ---- sub-pixel decomposition of the transposed conv: per-tap phase weights ----
    # tap t=(dy,dx) feeds output phase (a,b) through wt[:, :, a-2dy+1, b-2dx+1] when
    # that kernel index is in range (zero block otherwise).
    offs = [(0, 0), (0, 1), (1, 0), (1, 1)]
    wdk = jnp.zeros((4, c_mid, 4 * c_mid), jnp.float32)
    for t, (dy, dx) in enumerate(offs):
        for ph, (a, b) in enumerate(offs):
            kh, kw = a - 2 * dy + 1, b - 2 * dx + 1
            if 0 <= kh <= 2 and 0 <= kw <= 2:
                wdk = wdk.at[t, :, ph * c_mid:(ph + 1) * c_mid].set(wt[:, :, kh, kw])
    # block-diagonal conv2 weight so each phase goes through the same 1x1 conv
    w2k = jnp.zeros((4 * c_mid, 4 * c_out), jnp.float32)
    for ph in range(4):
        w2k = w2k.at[ph * c_mid:(ph + 1) * c_mid, ph * c_out:(ph + 1) * c_out].set(w2)

    scale_d4 = jnp.tile(scale_d, 4)
    scale2_4 = jnp.tile(scale2, 4)

    return dict(
        # f32 parameters for the reference implementation
        w1=w1, scale1=scale1, shift1=shift1,
        w_deq=w_deq, scale_d=scale_d, shift_d=shift_d,
        w2=w2, scale2=scale2, shift2=shift2,
        # kernel parameters: BN scale folded into the weights (fold in f32, then bf16);
        # only shift + ReLU remain in the kernel epilogues.
        w1k=(w1 * scale1[None, :]).astype(jnp.bfloat16),
        b1k=shift1.reshape(1, c_mid).astype(jnp.float32),
        wdk=(wdk * scale_d4[None, None, :]).astype(jnp.bfloat16),
        bdk=jnp.tile(shift_d, 4).reshape(1, 4 * c_mid).astype(jnp.float32),
        w2k=(w2k * scale2_4[None, :]).astype(jnp.bfloat16),
        b2k=jnp.tile(shift2, 4).reshape(1, 4 * c_out).astype(jnp.float32),
    )


# --------------------------------------------------------------------------- forward
@functools.partial(jax.jit, static_argnums=(1,))
def decoder_block_forward(x_nchw, output_size, p):
    n, c_in, h, w = x_nchw.shape
    assert c_in % 4 == 0
    c_mid = c_in // 4
    c_out = p["w2"].shape[1]
    ho, wo = output_size
    assert 2 * h - 1 <= ho <= 2 * h and 2 * w - 1 <= wo <= 2 * w, "invalid output_size"

    th, ht, h_pad, wp = _plan_row_tile(n, h, w, c_in, c_out)

    # cast to bf16 BEFORE the NCHW->NHWC relayout (moves half the bytes)
    x = jnp.transpose(x_nchw.astype(jnp.bfloat16), (0, 2, 3, 1))
    if h_pad != h or wp != w:
        x = jnp.pad(x, ((0, 0), (0, h_pad - h), (0, wp - w), (0, 0)))
    x2d = x.reshape(n * h_pad * wp, c_in)

    o2d = _fused_decoder_call(x2d, p, n=n, h=h, w=w, th=th, ht=ht, h_pad=h_pad,
                              wp=wp, c_in=c_in, c_mid=c_mid, c_out=c_out)

    # output columns = 4 phases x c_out -> interleave phases back into 2x-upsampled NCHW
    o = o2d.reshape(n, h_pad, wp, 2, 2, c_out)[:, :h, :w]       # (n, y, x, a, b, c)
    out = jnp.transpose(o, (0, 5, 1, 3, 2, 4)).reshape(n, c_out, 2 * h, 2 * w)
    return out[:, :, :ho, :wo].astype(jnp.float32)              # output_padding 0/1


# --------------------------------------------------------------------------- reference
def reference_decoder(x_nchw, output_size, p):
    hp = jax.lax.Precision.HIGHEST
    x = jnp.transpose(x_nchw, (0, 2, 3, 1)).astype(jnp.float32)
    y = jnp.einsum("nhwc,cd->nhwd", x, p["w1"], precision=hp)
    y = jnp.maximum(y * p["scale1"] + p["shift1"], 0.0)
    ho, wo = output_size
    h, w = x.shape[1], x.shape[2]
    op_h = ho - ((h - 1) * 2 - 2 + 3)
    op_w = wo - ((w - 1) * 2 - 2 + 3)
    y = jax.lax.conv_general_dilated(
        y, p["w_deq"], window_strides=(1, 1),
        padding=((1, 1 + op_h), (1, 1 + op_w)),
        lhs_dilation=(2, 2),
        dimension_numbers=("NHWC", "HWIO", "NHWC"),
        precision=hp)
    y = jnp.maximum(y * p["scale_d"] + p["shift_d"], 0.0)
    y = jnp.einsum("nhwc,cd->nhwd", y, p["w2"], precision=hp)
    y = jnp.maximum(y * p["scale2"] + p["shift2"], 0.0)
    return jnp.transpose(y, (0, 3, 1, 2))


if __name__ == "__main__":
    N, C_IN, C_OUT, H, W = 2, 16, 8, 16, 16
    x = jax.random.normal(jax.random.PRNGKey(0), (N, C_IN, H, W), jnp.float32)
    params = init_params(jax.random.PRNGKey(1), C_IN, C_OUT)

    # usual LinkNet 2x upsample, plus the output_padding=0 size to exercise slicing
    for output_size in [(2 * H, 2 * W), (2 * H - 1, 2 * W - 1)]:
        y = jax.block_until_ready(decoder_block_forward(x, output_size, params))
        assert y.shape == (N, C_OUT, output_size[0], output_size[1]), y.shape
        y_ref = reference_decoder(x, output_size, params)
        assert bool(jnp.allclose(y, y_ref, rtol=4e-2, atol=4e-2)), "mismatch vs reference"

    print("KERNEL_OK")
</pallas_src>

<mosaic_0001>
module attributes {stable_mosaic.version = 11 : i64} {
  func.func @_decoder_block_kernel(%arg0: i32, %arg1: i32, %arg2: memref<128x16xbf16, #tpu.memory_space<vmem>>, %arg3: memref<16x16xbf16, #tpu.memory_space<vmem>>, %arg4: memref<16x4xbf16, #tpu.memory_space<vmem>>, %arg5: memref<1x4xf32, #tpu.memory_space<vmem>>, %arg6: memref<4x4x16xbf16, #tpu.memory_space<vmem>>, %arg7: memref<1x16xf32, #tpu.memory_space<vmem>>, %arg8: memref<16x32xbf16, #tpu.memory_space<vmem>>, %arg9: memref<1x32xf32, #tpu.memory_space<vmem>>, %arg10: memref<128x32xbf16, #tpu.memory_space<vmem>>) attributes {dimension_semantics = [#tpu.dimension_semantics<parallel>, #tpu.dimension_semantics<parallel>], iteration_bounds = array<i64: 2, 2>, scalar_prefetch = 0 : i64, scratch_operands = 0 : i64, tpu.core_type = #tpu.core_type<tc>, window_params = [{transform_indices = @transform_0, window_bounds = array<i64: 128, 16>}, {transform_indices = @transform_1, window_bounds = array<i64: 16, 16>}, {pipeline_mode = #tpu.pipeline_mode<synchronous>, transform_indices = @transform_2, window_bounds = array<i64: 16, 4>}, {pipeline_mode = #tpu.pipeline_mode<synchronous>, transform_indices = @transform_3, window_bounds = array<i64: 1, 4>}, {pipeline_mode = #tpu.pipeline_mode<synchronous>, transform_indices = @transform_4, window_bounds = array<i64: 4, 4, 16>}, {pipeline_mode = #tpu.pipeline_mode<synchronous>, transform_indices = @transform_5, window_bounds = array<i64: 1, 16>}, {pipeline_mode = #tpu.pipeline_mode<synchronous>, transform_indices = @transform_6, window_bounds = array<i64: 16, 32>}, {pipeline_mode = #tpu.pipeline_mode<synchronous>, transform_indices = @transform_7, window_bounds = array<i64: 1, 32>}, {transform_indices = @transform_8, window_bounds = array<i64: 128, 32>}]} {
    %c0 = arith.constant 0 : index
    %c0_0 = arith.constant 0 : index
    %0 = vector.load %arg2[%c0, %c0_0] : memref<128x16xbf16, #tpu.memory_space<vmem>>, vector<128x16xbf16>
    %c0_1 = arith.constant 0 : index
    %c0_2 = arith.constant 0 : index
    %1 = vector.load %arg4[%c0_1, %c0_2] : memref<16x4xbf16, #tpu.memory_space<vmem>>, vector<16x4xbf16>
    %cst = arith.constant dense<0.000000e+00> : vector<128x4xf32>
    %2 = tpu.matmul %0, %1, %cst {dimension_numbers = #tpu.dot_dimension_numbers<[1], [0], [0], [1], [0, 0, 1, 1], [], []>} : vector<128x16xbf16>, vector<16x4xbf16>, vector<128x4xf32> -> vector<128x4xf32>
    %c0_3 = arith.constant 0 : index
    %c0_4 = arith.constant 0 : index
    %3 = vector.load %arg5[%c0_3, %c0_4] : memref<1x4xf32, #tpu.memory_space<vmem>>, vector<1x4xf32>
    %4 = vector.broadcast %3 : vector<1x4xf32> to vector<128x4xf32>
    %5 = arith.addf %2, %4 : vector<128x4xf32>
    %cst_5 = arith.constant 0.000000e+00 : f32
    %6 = vector.broadcast %cst_5 : f32 to vector<128x4xf32>
    %7 = arith.maximumf %5, %6 : vector<128x4xf32>
    %c0_6 = arith.constant 0 : index
    %c0_7 = arith.constant 0 : index
    %8 = vector.load %arg3[%c0_6, %c0_7] : memref<16x16xbf16, #tpu.memory_space<vmem>>, vector<16x16xbf16>
    %c0_8 = arith.constant 0 : index
    %c0_9 = arith.constant 0 : index
    %9 = vector.load %arg4[%c0_8, %c0_9] : memref<16x4xbf16, #tpu.memory_space<vmem>>, vector<16x4xbf16>
    %cst_10 = arith.constant dense<0.000000e+00> : vector<16x4xf32>
    %10 = tpu.matmul %8, %9, %cst_10 {dimension_numbers = #tpu.dot_dimension_numbers<[1], [0], [0], [1], [0, 0, 1, 1], [], []>} : vector<16x16xbf16>, vector<16x4xbf16>, vector<16x4xf32> -> vector<16x4xf32>
    %c0_11 = arith.constant 0 : index
    %c0_12 = arith.constant 0 : index
    %11 = vector.load %arg5[%c0_11, %c0_12] : memref<1x4xf32, #tpu.memory_space<vmem>>, vector<1x4xf32>
    %12 = vector.broadcast %11 : vector<1x4xf32> to vector<16x4xf32>
    %13 = arith.addf %10, %12 : vector<16x4xf32>
    %cst_13 = arith.constant 0.000000e+00 : f32
    %14 = vector.broadcast %cst_13 : f32 to vector<16x4xf32>
    %15 = arith.maximumf %13, %14 : vector<16x4xf32>
    %16 = tpu.iota {dimensions = array<i32: 0>} : vector<8x16x1xi32>
    %17 = vector.shape_cast %16 : vector<8x16x1xi32> to vector<128x1xi32>
    %18 = tpu.iota {dimensions = array<i32: 1>} : vector<8x16x1xi32>
    %19 = vector.shape_cast %18 : vector<8x16x1xi32> to vector<128x1xi32>
    %c8_i32 = arith.constant 8 : i32
    %20 = arith.muli %arg1, %c8_i32 : i32
    %21 = vector.broadcast %20 : i32 to vector<128x1xi32>
    %22 = arith.addi %21, %17 : vector<128x1xi32>
    %c16_i32 = arith.constant 16 : i32
    %23 = vector.broadcast %c16_i32 : i32 to vector<128x1xi32>
    %24 = arith.cmpi slt, %22, %23 : vector<128x1xi32>
    %cst_14 = arith.constant 0.000000e+00 : f32
    %25 = vector.shape_cast %24 : vector<128x1xi1> to vector<128x1xi1>
    %26 = vector.broadcast %25 : vector<128x1xi1> to vector<128x4xi1>
    %27 = vector.broadcast %cst_14 : f32 to vector<128x4xf32>
    %28 = arith.select %26, %7, %27 : vector<128x4xi1>, vector<128x4xf32>
    %c1_i32 = arith.constant 1 : i32
    %29 = arith.addi %arg1, %c1_i32 : i32
    %c8_i32_15 = arith.constant 8 : i32
    %30 = arith.muli %29, %c8_i32_15 : i32
    %c16_i32_16 = arith.constant 16 : i32
    %31 = arith.cmpi slt, %30, %c16_i32_16 : i32
    %cst_17 = arith.constant 0.000000e+00 : f32
    %32 = vector.broadcast %cst_17 : f32 to vector<16x4xf32>
    %33 = arith.select %31, %15, %32 : vector<16x4xf32>
    %cst_18 = arith.constant 0.000000e+00 : f32
    %34 = vector.broadcast %cst_18 : f32 to vector<8x4xf32>
    %35 = tpu.concatenate %28, %33, %34 in 0 : vector<128x4xf32>, vector<16x4xf32>, vector<8x4xf32> -> vector<152x4xf32>
    %c15_i32 = arith.constant 15 : i32
    %36 = vector.broadcast %c15_i32 : i32 to vector<128x1xi32>
    %37 = arith.cmpi slt, %19, %36 : vector<128x1xi32>
    %38 = vector.extract_strided_slice %35 {offsets = [1, 0], sizes = [128, 4], strides = [1, 1]} : vector<152x4xf32> to vector<128x4xf32>
    %cst_19 = arith.constant 0.000000e+00 : f32
    %39 = vector.shape_cast %37 : vector<128x1xi1> to vector<128x1xi1>
    %40 = vector.broadcast %39 : vector<128x1xi1> to vector<128x4xi1>
    %41 = vector.broadcast %cst_19 : f32 to vector<128x4xf32>
    %42 = arith.select %40, %38, %41 : vector<128x4xi1>, vector<128x4xf32>
    %43 = vector.extract_strided_slice %35 {offsets = [16, 0], sizes = [128, 4], strides = [1, 1]} : vector<152x4xf32> to vector<128x4xf32>
    %44 = vector.extract_strided_slice %35 {offsets = [17, 0], sizes = [128, 4], strides = [1, 1]} : vector<152x4xf32> to vector<128x4xf32>
    %cst_20 = arith.constant 0.000000e+00 : f32
    %45 = vector.shape_cast %37 : vector<128x1xi1> to vector<128x1xi1>
    %46 = vector.broadcast %45 : vector<128x1xi1> to vector<128x4xi1>
    %47 = vector.broadcast %cst_20 : f32 to vector<128x4xf32>
    %48 = arith.select %46, %44, %47 : vector<128x4xi1>, vector<128x4xf32>
    %49 = arith.truncf %28 : vector<128x4xf32> to vector<128x4xbf16>
    %c0_21 = arith.constant 0 : index
    %c0_22 = arith.constant 0 : index
    %c0_23 = arith.constant 0 : index
    %50 = vector.load %arg6[%c0_21, %c0_22, %c0_23] : memref<4x4x16xbf16, #tpu.memory_space<vmem>>, vector<1x4x16xbf16>
    %51 = vector.shape_cast %50 : vector<1x4x16xbf16> to vector<4x16xbf16>
    %cst_24 = arith.constant dense<0.000000e+00> : vector<128x16xf32>
    %52 = tpu.matmul %49, %51, %cst_24 {dimension_numbers = #tpu.dot_dimension_numbers<[1], [0], [0], [1], [0, 0, 1, 1], [], []>} : vector<128x4xbf16>, vector<4x16xbf16>, vector<128x16xf32> -> vector<128x16xf32>
    %53 = arith.truncf %42 : vector<128x4xf32> to vector<128x4xbf16>
    %c1 = arith.constant 1 : index
    %c0_25 = arith.constant 0 : index
    %c0_26 = arith.constant 0 : index
    %54 = vector.load %arg6[%c1, %c0_25, %c0_26] : memref<4x4x16xbf16, #tpu.memory_space<vmem>>, vector<1x4x16xbf16>
    %55 = vector.shape_cast %54 : vector<1x4x16xbf16> to vector<4x16xbf16>
    %cst_27 = arith.constant dense<0.000000e+00> : vector<128x16xf32>
    %56 = tpu.matmul %53, %55, %cst_27 {dimension_numbers = #tpu.dot_dimension_numbers<[1], [0], [0], [1], [0, 0, 1, 1], [], []>} : vector<128x4xbf16>, vector<4x16xbf16>, vector<128x16xf32> -> vector<128x16xf32>
    %57 = arith.addf %52, %56 : vector<128x16xf32>
    %58 = arith.truncf %43 : vector<128x4xf32> to vector<128x4xbf16>
    %c2 = arith.constant 2 : index
    %c0_28 = arith.constant 0 : index
    %c0_29 = arith.constant 0 : index
    %59 = vector.load %arg6[%c2, %c0_28, %c0_29] : memref<4x4x16xbf16, #tpu.memory_space<vmem>>, vector<1x4x16xbf16>
    %60 = vector.shape_cast %59 : vector<1x4x16xbf16> to vector<4x16xbf16>
    %cst_30 = arith.constant dense<0.000000e+00> : vector<128x16xf32>
    %61 = tpu.matmul %58, %60, %cst_30 {dimension_numbers = #tpu.dot_dimension_numbers<[1], [0], [0], [1], [0, 0, 1, 1], [], []>} : vector<128x4xbf16>, vector<4x16xbf16>, vector<128x16xf32> -> vector<128x16xf32>
    %62 = arith.addf %57, %61 : vector<128x16xf32>
    %63 = arith.truncf %48 : vector<128x4xf32> to vector<128x4xbf16>
    %c3 = arith.constant 3 : index
    %c0_31 = arith.constant 0 : index
    %c0_32 = arith.constant 0 : index
    %64 = vector.load %arg6[%c3, %c0_31, %c0_32] : memref<4x4x16xbf16, #tpu.memory_space<vmem>>, vector<1x4x16xbf16>
    %65 = vector.shape_cast %64 : vector<1x4x16xbf16> to vector<4x16xbf16>
    %cst_33 = arith.constant dense<0.000000e+00> : vector<128x16xf32>
    %66 = tpu.matmul %63, %65, %cst_33 {dimension_numbers = #tpu.dot_dimension_numbers<[1], [0], [0], [1], [0, 0, 1, 1], [], []>} : vector<128x4xbf16>, vector<4x16xbf16>, vector<128x16xf32> -> vector<128x16xf32>
    %67 = arith.addf %62, %66 : vector<128x16xf32>
    %c0_34 = arith.constant 0 : index
    %c0_35 = arith.constant 0 : index
    %68 = vector.load %arg7[%c0_34, %c0_35] : memref<1x16xf32, #tpu.memory_space<vmem>>, vector<1x16xf32>
    %69 = vector.broadcast %68 : vector<1x16xf32> to vector<128x16xf32>
    %70 = arith.addf %67, %69 : vector<128x16xf32>
    %cst_36 = arith.constant 0.000000e+00 : f32
    %71 = vector.broadcast %cst_36 : f32 to vector<128x16xf32>
    %72 = arith.maximumf %70, %71 : vector<128x16xf32>
    %73 = arith.truncf %72 : vector<128x16xf32> to vector<128x16xbf16>
    %c0_37 = arith.constant 0 : index
    %c0_38 = arith.constant 0 : index
    %74 = vector.load %arg8[%c0_37, %c0_38] : memref<16x32xbf16, #tpu.memory_space<vmem>>, vector<16x32xbf16>
    %cst_39 = arith.constant dense<0.000000e+00> : vector<128x32xf32>
    %75 = tpu.matmul %73, %74, %cst_39 {dimension_numbers = #tpu.dot_dimension_numbers<[1], [0], [0], [1], [0, 0, 1, 1], [], []>} : vector<128x16xbf16>, vector<16x32xbf16>, vector<128x32xf32> -> vector<128x32xf32>
    %c0_40 = arith.constant 0 : index
    %c0_41 = arith.constant 0 : index
    %76 = vector.load %arg9[%c0_40, %c0_41] : memref<1x32xf32, #tpu.memory_space<vmem>>, vector<1x32xf32>
    %77 = vector.broadcast %76 : vector<1x32xf32> to vector<128x32xf32>
    %78 = arith.addf %75, %77 : vector<128x32xf32>
    %cst_42 = arith.constant 0.000000e+00 : f32
    %79 = vector.broadcast %cst_42 : f32 to vector<128x32xf32>
    %80 = arith.maximumf %78, %79 : vector<128x32xf32>
    %81 = arith.truncf %80 : vector<128x32xf32> to vector<128x32xbf16>
    %c0_43 = arith.constant 0 : index
    %c0_44 = arith.constant 0 : index
    %82 = vector.load %arg10[%c0_43, %c0_44] : memref<128x32xbf16, #tpu.memory_space<vmem>>, vector<128x32xbf16>
    tpu.vector_store %arg10[%c0_43, %c0_44], %81 {strides = array<i32>} : memref<128x32xbf16, #tpu.memory_space<vmem>>, vector<128x32xbf16>,
    return
  }
  func.func @transform_0(%arg0: i32, %arg1: i32) -> (i32, i32) {
    %c2_i32 = arith.constant 2 : i32
    %0 = arith.muli %arg0, %c2_i32 : i32
    %1 = arith.addi %0, %arg1 : i32
    %c0_i32 = arith.constant 0 : i32
    %c0_i32_0 = arith.constant 0 : i32
    return %1, %c0_i32 : i32, i32
  }
  func.func @transform_1(%arg0: i32, %arg1: i32) -> (i32, i32) {
    %c16_i32 = arith.constant 16 : i32
    %0 = arith.muli %arg0, %c16_i32 : i32
    %c1_i32 = arith.constant 1 : i32
    %1 = arith.addi %arg1, %c1_i32 : i32
    %c8_i32 = arith.constant 8 : i32
    %2 = arith.muli %1, %c8_i32 : i32
    %c15_i32 = arith.constant 15 : i32
    %3 = arith.minsi %2, %c15_i32 : i32
    %4 = arith.addi %0, %3 : i32
    %c0_i32 = arith.constant 0 : i32
    %c0_i32_0 = arith.constant 0 : i32
    return %4, %c0_i32 : i32, i32
  }
  func.func @transform_2(%arg0: i32, %arg1: i32) -> (i32, i32) {
    %c0_i32 = arith.constant 0 : i32
    %c0_i32_0 = arith.constant 0 : i32
    %c0_i32_1 = arith.constant 0 : i32
    return %c0_i32, %c0_i32_0 : i32, i32
  }
  func.func @transform_3(%arg0: i32, %arg1: i32) -> (i32, i32) {
    %c0_i32 = arith.constant 0 : i32
    %c0_i32_0 = arith.constant 0 : i32
    %c0_i32_1 = arith.constant 0 : i32
    return %c0_i32, %c0_i32_0 : i32, i32
  }
  func.func @transform_4(%arg0: i32, %arg1: i32) -> (i32, i32, i32) {
    %c0_i32 = arith.constant 0 : i32
    %c0_i32_0 = arith.constant 0 : i32
    %c0_i32_1 = arith.constant 0 : i32
    %c0_i32_2 = arith.constant 0 : i32
    return %c0_i32, %c0_i32_0, %c0_i32_1 : i32, i32, i32
  }
  func.func @transform_5(%arg0: i32, %arg1: i32) -> (i32, i32) {
    %c0_i32 = arith.constant 0 : i32
    %c0_i32_0 = arith.constant 0 : i32
    %c0_i32_1 = arith.constant 0 : i32
    return %c0_i32, %c0_i32_0 : i32, i32
  }
  func.func @transform_6(%arg0: i32, %arg1: i32) -> (i32, i32) {
    %c0_i32 = arith.constant 0 : i32
    %c0_i32_0 = arith.constant 0 : i32
    %c0_i32_1 = arith.constant 0 : i32
    return %c0_i32, %c0_i32_0 : i32, i32
  }
  func.func @transform_7(%arg0: i32, %arg1: i32) -> (i32, i32) {
    %c0_i32 = arith.constant 0 : i32
    %c0_i32_0 = arith.constant 0 : i32
    %c0_i32_1 = arith.constant 0 : i32
    return %c0_i32, %c0_i32_0 : i32, i32
  }
  func.func @transform_8(%arg0: i32, %arg1: i32) -> (i32, i32) {
    %c2_i32 = arith.constant 2 : i32
    %0 = arith.muli %arg0, %c2_i32 : i32
    %1 = arith.addi %0, %arg1 : i32
    %c0_i32 = arith.constant 0 : i32
    %c0_i32_0 = arith.constant 0 : i32
    return %1, %c0_i32 : i32, i32
  }
}

</mosaic_0001>

<bundles_post_ra>
// kernel: decoder_block_forward.1
= control target key start
LH: loop header
LB: loop body
LE: loop exit
PB: predicated region body
PF: predicated region fallthrough
CT: control target
= control target key end

     0   :  { %s1612_s27 = smov 0   ;;  %s1614_s28 = smov 0   ;;  %s1935_s0 = inlined_call_operand.vmem [shape: bf16[512,16], index: 0, kind: input, shape index: {}, may-alias: {0,1}]   ;;  %s1936_s1 = inlined_call_operand.vmem [shape: bf16[512,16], index: 1, kind: input, shape index: {}, may-alias: {0,1}]   ;;  %s1937_s2 = inlined_call_operand.vmem [shape: bf16[16,4], index: 2, kind: input, shape index: {}]   ;;  %s1938_s3 = inlined_call_operand.vmem [shape: f32[1,4], index: 3, kind: input, shape index: {}]   ;;  %s1939_s4 = inlined_call_operand.vmem [shape: bf16[4,4,16], index: 4, kind: input, shape index: {}]   ;;  %s1940_s5 = inlined_call_operand.vmem [shape: f32[1,16], index: 5, kind: input, shape index: {}]   ;;  %s1941_s6 = inlined_call_operand.vmem [shape: bf16[16,32], index: 6, kind: input, shape index: {}]   ;;  %s1942_s7 = inlined_call_operand.vmem [shape: f32[1,32], index: 7, kind: input, shape index: {}]   ;;  %s1943_s8 = inlined_call_operand.vmem [shape: bf16[512,32], index: 8, kind: output, shape index: {}]  }
   0x1   :  { %s1616_s29 = smov 0   ;;  %s1618_s30 = smov 0  }
   0x2   :  { %s1620_s9 = smov 0  }
   0x3 LB: > { %s27_s10 = sadd.s32 1, %s1556_s29  ;;  %s30_s11 = sadd.s32 1, %s1560_s30  ;;  %s1564_s9 = sphi %s1620_s9, %s18_s9   ;;  %s1560_s30 = sphi %s1618_s30, %s1949_s30   ;;  %s1556_s29 = sphi %s1616_s29, %s1948_s29   ;;  %s1552_s28 = sphi %s1614_s28, %s1947_s28   ;;  %s1548_s27 = sphi %s1612_s27, %s1946_s27  }
   0x4   : > { %p28_p0 = scmp.ge.s32.totalorder %s27_s10, 2  ;;  %p1350_p1 = scmp.ge.s32.totalorder %s1564_s9, 1 }
   0x5   : > { %p322_p2 = scmp.lt.s32.totalorder %s1564_s9, 5 }
   0x6   : > { %s1951_s10 = smov (%p28_p0, %s27_s10), 0  ;;  %s1953_s11 = smov (!%p28_p0, %s30_s11), %s1560_s30 }
   0x7   : > { %p323_p3 = pnand %p1350_p1, %p322_p2  ;;  %p32_p4 = scmp.ge.s32.totalorder %s1953_s11, 2 }
   0x8   : > { %s1351_s14 = sshll.u32 (!%p323_p3), %s1552_s28, 1  ;;  %s1465_s23 = sshll.u32 (!%p323_p3), %s1548_s27, 3 }
   0x9   : > { %s1955_s11 = smov (%p32_p4, %s1953_s11), 0  ;;  %326 = sbr.rel (%p323_p3) target bundleno = 622 (0x26e), region = 52 }
   0xa   : > { %s372_s15 = sadd.s32 (!%p323_p3), %s1548_s27, %s1351_s14  ;;  %s1670_s24 = sadd.s32 (!%p323_p3), 8, %s1465_s23 }
   0xb   : > { %s1352_s16 = sshll.u32 (!%p323_p3), %s372_s15, 4  ;;  %p384_p6 = scmp.lt.s32.totalorder (!%p323_p3), %s1670_s24, 15 }
   0xc   : > { %p374_p5 = scmp.lt.s32.totalorder (!%p323_p3), %s1352_s16, 63  ;;  %s1354_s26 = sshll.u32 (!%p323_p3), %s1552_s28, 4 }
   0xd   : > { %p648_p8 = scmp.lt.s32.totalorder (!%p323_p3), %s1670_s24, 16 }
   0xe   : > { %v1475_v0 = vld [vmem:[%s1937_s2] sm:$0xff]  ;;  %s1957_s16 = smov (!%p374_p5, %s1352_s16), 63  ;;  %vm478_vm0 = vcmask 130048   ;;  %vm797_vm1 = vcmask 1041408   ;;  %v1699_v21 = vstv %s1465_s23  ;;  %v594_v25 = vlaneseq }
   0xf   : > { %510 = vmatpush.bf16.msra.mxu0 %v1475_v0  ;;  %1480 = vmatpush.bf16.msra.mxu3 %v1475_v0  ;;  %s1353_s17 = sshll.u32 %s1957_s16, 2  ;;  %v1438_v5 = vld [vmem:[%s1939_s4 + $0x6] sm:$0x3]  ;;  %v761_v12 = vld [vmem:[%s1939_s4] sm:$0x3]  ;;  %vm606_vm2 = vcmp.lt.s32.totalorder %v1699_v21, 16 }
  0x10   : > { %585 = vmatpush.bf16.msra.mxu1 %v1475_v0  ;;  %s377_s20 = scalar_lea.vmem %s1935_s0, %s1353_s17  ;;  %v1007_v6 = vsel %vm797_vm1, %v1438_v5, 0  ;;  %v875_v13 = vsel %vm797_vm1, %v761_v12, 0  ;;  %v1412_v14 = vld [vmem:[%s1939_s4 + $0x2] sm:$0x3]  ;;  %v1429_v16 = vld [vmem:[%s1939_s4 + $0x4] sm:$0x3]  ;;  %s1871_s28 = scalar_lea.vmem %s1943_s8, %s1353_s17 }
  0x11   : > { %v1467_v1 = vld [vmem:[%s377_s20] sm:$0xff]  ;;  %v1468_v2 = vld [vmem:[%s377_s20 + $0x8] sm:$0xff]  ;;  %v1469_v3 = vld [vmem:[%s377_s20 + $0x10] sm:$0xff]  ;;  %s385_s25 = scalar_select %p384_p6, %s1670_s24, 15  ;;  %v799_v15 = vsel %vm797_vm1, %v1412_v14, 0  ;;  %v933_v17 = vsel %vm797_vm1, %v1429_v16, 0 }
  0x12   : > { %1397 = vmatmul.msk.bf16.vlgmr.msra.gmra.mxu0 %vm478_vm0, %v1467_v1  ;;  %v1472_v4 = vld [vmem:[%s377_s20 + $0x28] sm:$0xff]  ;;  %v1470_v7 = vld [vmem:[%s377_s20 + $0x18] sm:$0xff]  ;;  %v1473_v8 = vld [vmem:[%s377_s20 + $0x30] sm:$0xff]  ;;  %1481 = vmatpush.bf16.msra.mxu2 %v799_v15  ;;  %vm772_vm3 = vcmask 31744   ;;  %v599_v30 = vadd.s32 1, %v1699_v21  ;;  %v595_v31 = vshrl.u32 %v594_v25, 7 }
  0x13   : > { %1402 = vmatmul.msk.bf16.vlgmr.msra.gmra.mxu3 %vm478_vm0, %v1472_v4  ;;  %1016 = vmatpush.bf16.msrb.mxu0 %v1007_v6  ;;  %v1471_v9 = vld [vmem:[%s377_s20 + $0x20] sm:$0xff]  ;;  %v1474_v10 = vld [vmem:[%s377_s20 + $0x38] sm:$0xff]  ;;  %s386_s12 = sadd.s32 %s1354_s26, %s385_s25  ;;  %vm677_vm5 = vcmask 1046528   ;;  %v600_v48 = vadd.s32 2, %v1699_v21  ;;  %v601_v0 = vadd.s32 3, %v1699_v21  ;;  %vm1235_vm14 = vcmask 257024  }
  0x14   : > { %s1356_s13 = sshll.u32 %s386_s12, 1  ;;  %884 = vmatpush.bf16.msrb.mxu3 %v875_v13  ;;  %808 = vmatpush.bf16.msrb.mxu1 %v799_v15  ;;  %v1696_v19 = vld [vmem:[%s1938_s3] ss:$0 sm:$0xff]  ;;  %vm607_vm4 = vcmp.lt.s32.totalorder %v599_v30, 16  ;;  %v1706_v34 = vadd.s32 8, %v595_v31 }
  0x15   : > { %p388_p7 = scmp.lt.s32.totalorder %s1356_s13, 63  ;;  %vm608_vm7 = vcmp.lt.s32.totalorder %v600_v48, 16  ;;  %vm609_vm8 = vcmp.lt.s32.totalorder %v601_v0, 16  ;;  %v604_v48 = vadd.s32 6, %v1699_v21  ;;  %v605_v0 = vadd.s32 7, %v1699_v21 }
  0x16   : > { %vm655_vm6 = vcmp.lt.s32.totalorder %v1706_v34, 15 }
  0x17   : > { %s1959_s13 = smov (!%p388_p7, %s1356_s13), 63  ;;  %vm612_vm11 = vcmp.lt.s32.totalorder %v604_v48, 16  ;;  %vm613_vm12 = vcmp.lt.s32.totalorder %v605_v0, 16 }
  0x18   : > { %s1357_s14 = sshll.u32 %s1959_s13, 2 }
  0x19   : > { %s391_s27 = scalar_lea.vmem %s1936_s1, %s1357_s14 }
  0x1a   : > { %v1476_v11 = vld [vmem:[%s391_s27] sm:$0xff]  ;;  %s649_s14 = scalar_select %p648_p8, 1, 0 }
  0x1b   : > { %1409 = vmatmul.msk.bf16.vlgmr.msra.gmra.mxu1 %vm478_vm0, %v1476_v11 }
  0x1c   : > { %942 = vmatpush.bf16.msra.mxu1 %v933_v17  ;;  %v602_v17 = vadd.s32 4, %v1699_v21 }
  0x1e   : > { %vm610_vm9 = vcmp.lt.s32.totalorder %v602_v17, 16 }
  0x22   : > { %1398 = vmatmul.msk.bf16.gmra.mxu0 %vm478_vm0, %v1468_v2 }
  0x23   : > { %1403 = vmatmul.msk.bf16.gmra.mxu3 %vm478_vm0, %v1473_v8 }
  0x32   : > { %1399 = vmatmul.msk.bf16.gmra.mxu0 %vm478_vm0, %v1469_v3 }
  0x33   : > { %1404 = vmatmul.msk.bf16.gmra.mxu3 %vm478_vm0, %v1474_v10 }
  0x42   : > { %1400 = vmatmul.msk.bf16.gmra.mxu0 %vm478_vm0, %v1470_v7 }
  0x52   : > { %1401 = vmatmul.msk.bf16.gmra.mxu0 %vm478_vm0, %v1471_v9 }
  0x8f   : > { %v512_v18 = vpop.f32.mrf.mxu0 }
  0x90   : > { %v513_v20 = vadd.f32 %v1696_v19, %v512_v18 }
  0x92   : > { %v552_v23 = vmax.f32 %v513_v20, 0.0 }
  0x94   : > { %v630_v27 = vsel %vm606_vm2, %v552_v23, 0.0 }
  0x95   : > { %v678_v39 = vrot.slane %v630_v27, 1 }
  0x96   : > { %v537_v10 = vpop.f32.mrf.mxu3 }
  0x97   : > { %v514_v22 = vpop.f32.mrf.mxu0  ;;  %v538_v25 = vadd.f32 %v1696_v19, %v537_v10 }
  0x98   : > { %v515_v24 = vadd.f32 %v1696_v19, %v514_v22 }
  0x99   : > { %v562_v30 = vmax.f32 %v538_v25, 0.0 }
  0x9a   : > { %v553_v26 = vmax.f32 %v515_v24, 0.0 }
  0x9c   : > { %v631_v28 = vsel %vm606_vm2, %v553_v26, 0.0  ;;  %v603_v26 = vadd.s32 5, %v1699_v21  ;;  %v1479_v21 = vld [vmem:[%s1941_s6] sm:$0xff] }
  0x9d   : > { %v753_v29 = vpack.c.bf16 %v631_v28, %v630_v27  ;;  %v679_v36 = vrot.slane %v631_v28, 1  ;;  %1161 = vmatpush.bf16.msrb.mxu2 %v1479_v21 }
  0x9e   : > { %v539_v23 = vpop.f32.mrf.mxu3  ;;  %vm611_vm10 = vcmp.lt.s32.totalorder %v603_v26, 16 }
  0x9f   : > { %v517_v32 = vpop.f32.mrf.mxu0  ;;  %1421 = vmatmul.msk.bf16.vlgmr.msrb.gmra.mxu3 %vm772_vm3, %v753_v29  ;;  %v680_v43 = vsel %vm677_vm5, %v678_v39, %v679_v36  ;;  %v640_v39 = vsel %vm611_vm10, %v562_v30, 0.0 }
  0xa0   : > { %v518_v33 = vadd.f32 %v1696_v19, %v517_v32 }
  0xa2   : > { %v554_v35 = vmax.f32 %v518_v33, 0.0 }
  0xa4   : > { %v632_v37 = vsel %vm607_vm4, %v554_v35, 0.0 }
  0xa5   : > { %v681_v38 = vrot.slane %v632_v37, 1 }
  0xa7   : > { %v682_v40 = vsel %vm677_vm5, %v679_v36, %v681_v38  ;;  %v519_v41 = vpop.f32.mrf.mxu0 }
  0xa8   : > { %v520_v42 = vadd.f32 %v1696_v19, %v519_v41  ;;  %v728_v44 = vsel %vm655_vm6, %v682_v40, 0.0  ;;  %v542_v40 = vpop.f32.mrf.mxu3 }
  0xa9   : > { %v762_v45 = vpack.c.bf16 %v728_v44, %v680_v43  ;;  %v697_v43 = vrot.slane %v640_v39, 1 }
  0xaa   : > { %v555_v46 = vmax.f32 %v520_v42, 0.0 }
  0xab   : > { %1413 = vmatmul.msk.bf16.vlgmr.msrb.gmra.mxu1 %vm772_vm3, %v762_v45 }
  0xac   : > { %v633_v47 = vsel %vm607_vm4, %v555_v46, 0.0  ;;  %v540_v46 = vadd.f32 %v1696_v19, %v539_v23 }
  0xad   : > { %v1718_v49 = vpack.c.bf16 %v633_v47, %v632_v37  ;;  %v683_v53 = vrot.slane %v633_v47, 1  ;;  %v543_v47 = vadd.f32 %v1696_v19, %v542_v40  ;;  %v1566_v40 = vmov 0.0  }
  0xaf   : > { %v522_v50 = vpop.f32.mrf.mxu0  ;;  %1422 = vmatmul.msk.bf16.gmra.mxu3 %vm772_vm3, %v1718_v49  ;;  %v684_v59 = vsel %vm677_vm5, %v681_v38, %v683_v53 }
  0xb0   : > { %v523_v51 = vadd.f32 %v1696_v19, %v522_v50 }
  0xb2   : > { %v556_v52 = vmax.f32 %v523_v51, 0.0  ;;  %v544_v51 = vpop.f32.mrf.mxu3 }
  0xb4   : > { %v634_v54 = vsel %vm608_vm7, %v556_v52, 0.0  ;;  %v563_v52 = vmax.f32 %v540_v46, 0.0 }
  0xb5   : > { %v685_v55 = vrot.slane %v634_v54, 1 }
  0xb7   : > { %v524_v56 = vpop.f32.mrf.mxu0  ;;  %v686_v57 = vsel %vm677_vm5, %v683_v53, %v685_v55  ;;  %v564_v53 = vmax.f32 %v543_v47, 0.0 }
  0xb8   : > { %v525_v58 = vadd.f32 %v1696_v19, %v524_v56  ;;  %v730_v60 = vsel %vm655_vm6, %v686_v57, 0.0 }
  0xb9   : > { %v763_v61 = vpack.c.bf16 %v730_v60, %v684_v59  ;;  %v642_v56 = vsel %vm612_vm11, %v564_v53, 0.0 }
  0xba   : > { %v557_v62 = vmax.f32 %v525_v58, 0.0  ;;  %v701_v59 = vrot.slane %v642_v56, 1  ;;  %v547_v60 = vpop.f32.mrf.mxu3 }
  0xbb   : > { %1414 = vmatmul.msk.bf16.gmra.mxu1 %vm772_vm3, %v763_v61  ;;  %1439 = vmatmul.msk.bf16.vlgmr.msrb.gmra.mxu0 %vm772_vm3, %v763_v61 }
  0xbc   : > { %v635_v63 = vsel %vm608_vm7, %v557_v62, 0.0  ;;  %v545_v62 = vadd.f32 %v1696_v19, %v544_v51 }
  0xbd   : > { %v1731_v1 = vpack.c.bf16 %v635_v63, %v634_v54  ;;  %v687_v5 = vrot.slane %v635_v63, 1  ;;  %v548_v63 = vadd.f32 %v1696_v19, %v547_v60 }
  0xbf   : > { %v527_v2 = vpop.f32.mrf.mxu0  ;;  %1423 = vmatmul.msk.bf16.gmra.mxu3 %vm772_vm3, %v1731_v1  ;;  %v688_v12 = vsel %vm677_vm5, %v685_v55, %v687_v5  ;;  %v641_v55 = vsel %vm611_vm10, %v563_v52, 0.0 }
  0xc0   : > { %v528_v3 = vadd.f32 %v1696_v19, %v527_v2  ;;  %v758_v57 = vpack.c.bf16 %v641_v55, %v640_v39  ;;  %v699_v58 = vrot.slane %v641_v55, 1 }
  0xc2   : > { %v558_v4 = vmax.f32 %v528_v3, 0.0  ;;  %v702_v61 = vsel %vm677_vm5, %v699_v58, %v701_v59  ;;  %v565_v3 = vmax.f32 %v545_v62, 0.0 }
  0xc3   : > { %v738_v2 = vsel %vm655_vm6, %v702_v61, 0.0 }
  0xc4   : > { %v636_v6 = vsel %vm609_vm8, %v558_v4, 0.0  ;;  %v566_v4 = vmax.f32 %v548_v63, 0.0 }
  0xc5   : > { %v689_v7 = vrot.slane %v636_v6, 1 }
  0xc7   : > { %v529_v8 = vpop.f32.mrf.mxu0  ;;  %v690_v9 = vsel %vm677_vm5, %v687_v5, %v689_v7 }
  0xc8   : > { %v530_v11 = vadd.f32 %v1696_v19, %v529_v8  ;;  %v732_v13 = vsel %vm655_vm6, %v690_v9, 0.0 }
  0xc9   : > { %v764_v14 = vpack.c.bf16 %v732_v13, %v688_v12  ;;  %v587_v12 = vpop.f32.mrf.mxu1 }
  0xca   : > { %v559_v15 = vmax.f32 %v530_v11, 0.0  ;;  %v549_v11 = vpop.f32.mrf.mxu3 }
  0xcb   : > { %1415 = vmatmul.msk.bf16.gmra.mxu1 %vm772_vm3, %v764_v14  ;;  %1440 = vmatmul.msk.bf16.gmra.mxu0 %vm772_vm3, %v764_v14  ;;  %v550_v14 = vadd.f32 %v1696_v19, %v549_v11 }
  0xcc   : > { %v637_v16 = vsel %vm609_vm8, %v559_v15, 0.0  ;;  %v588_v15 = vadd.f32 %v1696_v19, %v587_v12 }
  0xcd   : > { %v1744_v18 = vpack.c.bf16 %v637_v16, %v636_v6  ;;  %v691_v27 = vrot.slane %v637_v16, 1  ;;  %v643_v6 = vsel %vm612_vm11, %v565_v3, 0.0 }
  0xce   : > { %v759_v8 = vpack.c.bf16 %v643_v6, %v642_v56  ;;  %v703_v9 = vrot.slane %v643_v6, 1 }
  0xcf   : > { %v532_v20 = vpop.f32.mrf.mxu0  ;;  %1424 = vmatmul.msk.bf16.gmra.mxu3 %vm772_vm3, %v1744_v18  ;;  %v692_v33 = vsel %vm677_vm5, %v689_v7, %v691_v27  ;;  %v644_v7 = vsel %vm613_vm12, %v566_v4, 0.0 }
  0xd0   : > { %v533_v22 = vadd.f32 %v1696_v19, %v532_v20  ;;  %v705_v10 = vrot.slane %v644_v7, 1  ;;  %v704_v16 = vsel %vm677_vm5, %v701_v59, %v703_v9  ;;  %v567_v20 = vmax.f32 %v550_v14, 0.0 }
  0xd2   : > { %v560_v24 = vmax.f32 %v533_v22, 0.0  ;;  %v706_v13 = vsel %vm677_vm5, %v703_v9, %v705_v10  ;;  %v592_v22 = vmax.f32 %v588_v15, 0.0  ;;  %v645_v25 = vsel %vm613_vm12, %v567_v20, 0.0 }
  0xd3   : > { %v740_v17 = vsel %vm655_vm6, %v706_v13, 0.0 }
  0xd4   : > { %v638_v28 = vsel %vm610_vm9, %v560_v24, 0.0  ;;  %v768_v23 = vpack.c.bf16 %v740_v17, %v704_v16 }
  0xd5   : > { %v693_v29 = vrot.slane %v638_v28, 1 }
  0xd7   : > { %v694_v31 = vsel %vm677_vm5, %v691_v27, %v693_v29  ;;  %v534_v32 = vpop.f32.mrf.mxu0  ;;  %v760_v27 = vpack.c.bf16 %v645_v25, %v644_v7 }
  0xd8   : > { %v734_v35 = vsel %vm655_vm6, %v694_v31, 0.0  ;;  %v535_v36 = vadd.f32 %v1696_v19, %v534_v32  ;;  %v589_v31 = vpop.f32.mrf.mxu1 }
  0xd9   : > { %v765_v37 = vpack.c.bf16 %v734_v35, %v692_v33  ;;  %v590_v35 = vadd.f32 %v1696_v19, %v589_v31 }
  0xda   : > { %v561_v38 = vmax.f32 %v535_v36, 0.0 }
  0xdb   : > { %1416 = vmatmul.msk.bf16.vlgmr.msra.gmra.mxu2 %vm772_vm3, %v765_v37  ;;  %1430 = vmatmul.msk.bf16.vlgmr.msra.gmra.mxu1 %vm772_vm3, %v1718_v49 }
  0xdc   : > { %1441 = vmatmul.msk.bf16.gmra.mxu0 %vm772_vm3, %v765_v37  ;;  %v639_v41 = vsel %vm610_vm9, %v561_v38, 0.0  ;;  %v593_v37 = vmax.f32 %v590_v35, 0.0 }
  0xdd   : > { %v695_v42 = vrot.slane %v639_v41, 1  ;;  %v757_v44 = vpack.c.bf16 %v639_v41, %v638_v28  ;;  %v707_v28 = vrot.slane %v645_v25, 1  ;;  %v747_v41 = vrot.slane %v1566_v40, 1 }
  0xdf   : > { %1425 = vmatmul.msk.bf16.gmra.mxu3 %vm772_vm3, %v757_v44  ;;  %v698_v45 = vsel %vm677_vm5, %v695_v42, %v697_v43  ;;  %v696_v49 = vsel %vm677_vm5, %v693_v29, %v695_v42  ;;  %v708_v32 = vsel %vm677_vm5, %v705_v10, %v707_v28 }
  0xe0   : > { %v736_v50 = vsel %vm655_vm6, %v698_v45, 0.0 }
  0xe1   : > { %v766_v54 = vpack.c.bf16 %v736_v50, %v696_v49 }
  0xeb   : > { %1431 = vmatmul.msk.bf16.gmra.mxu1 %vm772_vm3, %v1731_v1  ;;  %1417 = vmatmul.msk.bf16.gmra.mxu2 %vm772_vm3, %v766_v54  ;;  %v700_v1 = vsel %vm677_vm5, %v697_v43, %v699_v58 }
  0xec   : > { %1442 = vmatmul.msk.bf16.gmra.mxu0 %vm772_vm3, %v766_v54  ;;  %v767_v5 = vpack.c.bf16 %v738_v2, %v700_v1  ;;  %v1834_v1 = vld [vmem:[%s1940_s5] ss:$0 sm:$0xff] }
  0xef   : > { %1426 = vmatmul.msk.bf16.gmra.mxu3 %vm772_vm3, %v758_v57 }
  0xfb   : > { %1432 = vmatmul.msk.bf16.gmra.mxu1 %vm772_vm3, %v1744_v18  ;;  %1418 = vmatmul.msk.bf16.gmra.mxu2 %vm772_vm3, %v767_v5  ;;  %v650_v18 = vstv %s649_s14 }
  0xfc   : > { %1443 = vmatmul.msk.bf16.gmra.mxu0 %vm772_vm3, %v767_v5  ;;  %vm1802_vm13 = vcmp.eq.s32.totalorder %v650_v18, 1 }
  0xfd   : > { %v652_v26 = vsel %vm1802_vm13, %v592_v22, 0.0  ;;  %v653_v38 = vsel %vm1802_vm13, %v593_v37, 0.0 }
  0xfe   : > { %v709_v29 = vrot.slane %v652_v26, 1  ;;  %v745_v39 = vrot.slane %v653_v38, 1  ;;  %v926_v54 = vpack.c.bf16 %v653_v38, %v652_v26 }
  0xff   : > { %1427 = vmatmul.msk.bf16.gmra.mxu3 %vm772_vm3, %v759_v8 }
 0x100   : > { %v710_v30 = vsel %vm677_vm5, %v707_v28, %v709_v29  ;;  %v748_v42 = vsel %vm677_vm5, %v745_v39, %v747_v41  ;;  %v746_v43 = vsel %vm677_vm5, %v709_v29, %v745_v39 }
 0x101   : > { %v742_v33 = vsel %vm655_vm6, %v710_v30, 0.0  ;;  %v752_v19 = vsel %vm655_vm6, %v748_v42, 0.0 }
 0x102   : > { %v769_v36 = vpack.c.bf16 %v742_v33, %v708_v32  ;;  %v1000_v45 = vpack.c.bf16 %v752_v19, %v746_v43 }
 0x10b   : > { %1433 = vmatmul.msk.bf16.gmra.mxu1 %vm772_vm3, %v757_v44  ;;  %1419 = vmatmul.msk.bf16.gmra.mxu2 %vm772_vm3, %v768_v23 }
 0x10c   : > { %1444 = vmatmul.msk.bf16.gmra.mxu0 %vm772_vm3, %v768_v23 }
 0x10f   : > { %1428 = vmatmul.msk.bf16.gmra.mxu3 %vm772_vm3, %v760_v27 }
 0x11b   : > { %1434 = vmatmul.msk.bf16.gmra.mxu1 %vm772_vm3, %v758_v57  ;;  %1420 = vmatmul.msk.bf16.gmra.mxu2 %vm772_vm3, %v769_v36 }
 0x11c   : > { %1445 = vmatmul.msk.bf16.gmra.mxu0 %vm772_vm3, %v769_v36 }
 0x122   : > { %v886_v47 = vpop.f32.mrf.mxu3 }
 0x128   : > { %v810_v44 = vpop.f32.mrf.mxu1 }
 0x129   : > { %v887_v59 = vadd.f32 %v886_v47, %v810_v44 }
 0x12a   : > { %v888_v51 = vpop.f32.mrf.mxu3 }
 0x12b   : > { %1435 = vmatmul.msk.bf16.gmra.mxu1 %vm772_vm3, %v759_v8 }
 0x12c   : > { %1446 = vmatmul.msk.bf16.gmra.mxu0 %vm772_vm3, %v1000_v45 }
 0x130   : > { %v812_v46 = vpop.f32.mrf.mxu1 }
 0x131   : > { %v889_v62 = vadd.f32 %v888_v51, %v812_v46 }
 0x132   : > { %v891_v55 = vpop.f32.mrf.mxu3 }
 0x138   : > { %v815_v48 = vpop.f32.mrf.mxu1  ;;  %v1018_v49 = vpop.f32.mrf.mxu0 }
 0x139   : > { %v892_v10 = vadd.f32 %v891_v55, %v815_v48 }
 0x13a   : > { %v893_v57 = vpop.f32.mrf.mxu3 }
 0x13b   : > { %1436 = vmatmul.msk.bf16.gmra.mxu1 %vm772_vm3, %v760_v27 }
 0x140   : > { %v817_v50 = vpop.f32.mrf.mxu1  ;;  %v1020_v52 = vpop.f32.mrf.mxu0 }
 0x141   : > { %v894_v15 = vadd.f32 %v893_v57, %v817_v50 }
 0x142   : > { %v896_v63 = vpop.f32.mrf.mxu3 }
 0x148   : > { %v820_v53 = vpop.f32.mrf.mxu1  ;;  %v1023_v34 = vpop.f32.mrf.mxu0 }
 0x149   : > { %v897_v30 = vadd.f32 %v896_v63, %v820_v53 }
 0x14a   : > { %v898_v11 = vpop.f32.mrf.mxu3 }
 0x14b   : > { %1437 = vmatmul.msk.bf16.gmra.mxu1 %vm772_vm3, %v926_v54 }
 0x150   : > { %v822_v56 = vpop.f32.mrf.mxu1  ;;  %v1025_v60 = vpop.f32.mrf.mxu0 }
 0x151   : > { %v899_v36 = vadd.f32 %v898_v11, %v822_v56 }
 0x152   : > { %v901_v22 = vpop.f32.mrf.mxu3 }
 0x158   : > { %v944_v58 = vpop.f32.mrf.mxu1 }
 0x159   : > { %v984_v61 = vadd.f32 %v944_v58, %v887_v59  ;;  %v1028_v6 = vpop.f32.mrf.mxu0 }
 0x15a   : > { %v903_v35 = vpop.f32.mrf.mxu3 }
 0x15b   : > { %v1058_v0 = vadd.f32 %v1018_v49, %v984_v61 }
 0x15d   : > { %v1078_v4 = vadd.f32 %v1834_v1, %v1058_v0 }
 0x15e   : > { %v825_v20 = vpop.f32.mrf.mxu2 }
 0x15f   : > { %v1094_v8 = vmax.f32 %v1078_v4, 0.0  ;;  %v902_v48 = vadd.f32 %v901_v22, %v825_v20 }
 0x160   : > { %v946_v2 = vpop.f32.mrf.mxu1 }
 0x161   : > { %v985_v3 = vadd.f32 %v946_v2, %v889_v62  ;;  %v1030_v14 = vpop.f32.mrf.mxu0 }
 0x162   : > { %v906_v43 = vpop.f32.mrf.mxu3 }
 0x163   : > { %v1059_v5 = vadd.f32 %v1020_v52, %v985_v3 }
 0x165   : > { %v1079_v7 = vadd.f32 %v1834_v1, %v1059_v5 }
 0x166   : > { %v827_v33 = vpop.f32.mrf.mxu2 }
 0x167   : > { %v1095_v21 = vmax.f32 %v1079_v7, 0.0  ;;  %v904_v52 = vadd.f32 %v903_v35, %v827_v33 }
 0x168   : > { %v949_v9 = vpop.f32.mrf.mxu1 }
 0x169   : > { %v1110_v12 = vpack.c.bf16 %v1095_v21, %v1094_v8  ;;  %v986_v13 = vadd.f32 %v949_v9, %v892_v10  ;;  %v1033_v28 = vpop.f32.mrf.mxu0 }
 0x16a   : > { %v908_v53 = vpop.f32.mrf.mxu3 }
 0x16b   : > { %1451 = vmatmul.msk.bf16.vlgmr.msrb.gmra.mxu2 %vm478_vm0, %v1110_v12  ;;  %v1060_v16 = vadd.f32 %v1023_v34, %v986_v13 }
 0x16d   : > { %v1080_v23 = vadd.f32 %v1834_v1, %v1060_v16 }
 0x16e   : > { %v830_v44 = vpop.f32.mrf.mxu2 }
 0x16f   : > { %v1096_v26 = vmax.f32 %v1080_v23, 0.0  ;;  %v907_v0 = vadd.f32 %v906_v43, %v830_v44 }
 0x170   : > { %v951_v17 = vpop.f32.mrf.mxu1 }
 0x171   : > { %v987_v18 = vadd.f32 %v951_v17, %v894_v15  ;;  %v1035_v40 = vpop.f32.mrf.mxu0 }
 0x172   : > { %v911_v2 = vpop.f32.mrf.mxu3 }
 0x173   : > { %v1061_v24 = vadd.f32 %v1025_v60, %v987_v18 }
 0x175   : > { %v1081_v25 = vadd.f32 %v1834_v1, %v1061_v24 }
 0x176   : > { %v832_v55 = vpop.f32.mrf.mxu2 }
 0x177   : > { %v1097_v27 = vmax.f32 %v1081_v25, 0.0 }
 0x178   : > { %v954_v29 = vpop.f32.mrf.mxu1 }
 0x179   : > { %v1111_v31 = vpack.c.bf16 %v1097_v27, %v1096_v26  ;;  %v988_v32 = vadd.f32 %v954_v29, %v897_v30  ;;  %v1038_v51 = vpop.f32.mrf.mxu0 }
 0x17a   : > { %v913_v10 = vpop.f32.mrf.mxu3 }
 0x17b   : > { %1452 = vmatmul.msk.bf16.gmra.mxu2 %vm478_vm0, %v1111_v31  ;;  %v1062_v37 = vadd.f32 %v1028_v6, %v988_v32  ;;  %v909_v6 = vadd.f32 %v908_v53, %v832_v55 }
 0x17d   : > { %v1082_v41 = vadd.f32 %v1834_v1, %v1062_v37 }
 0x17e   : > { %v835_v4 = vpop.f32.mrf.mxu2 }
 0x17f   : > { %v1098_v45 = vmax.f32 %v1082_v41, 0.0  ;;  %v912_v18 = vadd.f32 %v911_v2, %v835_v4 }
 0x180   : > { %v956_v38 = vpop.f32.mrf.mxu1 }
 0x181   : > { %v989_v39 = vadd.f32 %v956_v38, %v899_v36  ;;  %v1040_v60 = vpop.f32.mrf.mxu0 }
 0x182   : > { %v916_v24 = vpop.f32.mrf.mxu3 }
 0x183   : > { %v1063_v42 = vadd.f32 %v1030_v14, %v989_v39 }
 0x185   : > { %v1083_v19 = vadd.f32 %v1834_v1, %v1063_v42 }
 0x186   : > { %v837_v13 = vpop.f32.mrf.mxu2 }
 0x187   : > { %v1099_v46 = vmax.f32 %v1083_v19, 0.0  ;;  %v914_v26 = vadd.f32 %v913_v10, %v837_v13 }
 0x188   : > { %v959_v47 = vpop.f32.mrf.mxu1 }
 0x189   : > { %v1112_v49 = vpack.c.bf16 %v1099_v46, %v1098_v45  ;;  %v990_v50 = vadd.f32 %v959_v47, %v902_v48  ;;  %v1043_v8 = vpop.f32.mrf.mxu0 }
 0x18a   : > { %v918_v35 = vpop.f32.mrf.mxu3 }
 0x18b   : > { %1453 = vmatmul.msk.bf16.gmra.mxu2 %vm478_vm0, %v1112_v49  ;;  %v1064_v54 = vadd.f32 %v1033_v28, %v990_v50 }
 0x18d   : > { %v1084_v57 = vadd.f32 %v1834_v1, %v1064_v54 }
 0x18e   : > { %v840_v25 = vpop.f32.mrf.mxu2 }
 0x18f   : > { %v1100_v61 = vmax.f32 %v1084_v57, 0.0 }
 0x190   : > { %v961_v34 = vpop.f32.mrf.mxu1 }
 0x191   : > { %v991_v56 = vadd.f32 %v961_v34, %v904_v52  ;;  %v1045_v22 = vpop.f32.mrf.mxu0 }
 0x192   : > { %v921_v48 = vpop.f32.mrf.mxu3 }
 0x193   : > { %v1065_v58 = vadd.f32 %v1035_v40, %v991_v56  ;;  %v917_v40 = vadd.f32 %v916_v24, %v840_v25 }
 0x195   : > { %v1085_v59 = vadd.f32 %v1834_v1, %v1065_v58 }
 0x196   : > { %v842_v38 = vpop.f32.mrf.mxu2 }
 0x197   : > { %v1101_v62 = vmax.f32 %v1085_v59, 0.0  ;;  %v919_v19 = vadd.f32 %v918_v35, %v842_v38 }
 0x198   : > { %v964_v63 = vpop.f32.mrf.mxu1 }
 0x199   : > { %v1113_v3 = vpack.c.bf16 %v1101_v62, %v1100_v61  ;;  %v992_v5 = vadd.f32 %v964_v63, %v907_v0  ;;  %v1048_v32 = vpop.f32.mrf.mxu0 }
 0x19a   : > { %v923_v59 = vpop.f32.mrf.mxu3 }
 0x19b   : > { %1454 = vmatmul.msk.bf16.gmra.mxu2 %vm478_vm0, %v1113_v3  ;;  %v1066_v7 = vadd.f32 %v1038_v51, %v992_v5 }
 0x19d   : > { %v1086_v11 = vadd.f32 %v1834_v1, %v1066_v7 }
 0x19e   : > { %v845_v47 = vpop.f32.mrf.mxu2 }
 0x19f   : > { %v1102_v15 = vmax.f32 %v1086_v11, 0.0  ;;  %v922_v34 = vadd.f32 %v921_v48, %v845_v47 }
 0x1a0   : > { %v966_v21 = vpop.f32.mrf.mxu1 }
 0x1a1   : > { %v993_v9 = vadd.f32 %v966_v21, %v909_v6  ;;  %v1050_v43 = vpop.f32.mrf.mxu0 }
 0x1a3   : > { %v1067_v12 = vadd.f32 %v1040_v60, %v993_v9 }
 0x1a5   : > { %v1087_v14 = vadd.f32 %v1834_v1, %v1067_v12 }
 0x1a6   : > { %v847_v58 = vpop.f32.mrf.mxu2 }
 0x1a7   : > { %v1103_v16 = vmax.f32 %v1087_v14, 0.0  ;;  %v924_v60 = vadd.f32 %v923_v59, %v847_v58 }
 0x1a8   : > { %v969_v17 = vpop.f32.mrf.mxu1 }
 0x1a9   : > { %v1114_v20 = vpack.c.bf16 %v1103_v16, %v1102_v15  ;;  %v994_v23 = vadd.f32 %v969_v17, %v912_v18  ;;  %v1053_v54 = vpop.f32.mrf.mxu0 }
 0x1ab   : > { %1455 = vmatmul.msk.bf16.gmra.mxu2 %vm478_vm0, %v1114_v20  ;;  %v1068_v27 = vadd.f32 %v1043_v8, %v994_v23  ;;  %v1863_v8 = vld [vmem:[%s1942_s7] ss:$0 sm:$0xff] }
 0x1ad   : > { %v1088_v30 = vadd.f32 %v1834_v1, %v1068_v27 }
 0x1af   : > { %v1104_v36 = vmax.f32 %v1088_v30, 0.0 }
 0x1b0   : > { %v971_v28 = vpop.f32.mrf.mxu1 }
 0x1b1   : > { %v995_v29 = vadd.f32 %v971_v28, %v914_v26  ;;  %v1055_v0 = vpop.f32.mrf.mxu0 }
 0x1b3   : > { %v1069_v31 = vadd.f32 %v1045_v22, %v995_v29 }
 0x1b5   : > { %v1089_v33 = vadd.f32 %v1834_v1, %v1069_v31 }
 0x1b7   : > { %v1105_v37 = vmax.f32 %v1089_v33, 0.0 }
 0x1b8   : > { %v974_v39 = vpop.f32.mrf.mxu1 }
 0x1b9   : > { %v1115_v41 = vpack.c.bf16 %v1105_v37, %v1104_v36  ;;  %v996_v42 = vadd.f32 %v974_v39, %v917_v40 }
 0x1bb   : > { %1456 = vmatmul.msk.bf16.gmra.mxu2 %vm478_vm0, %v1115_v41  ;;  %v1070_v44 = vadd.f32 %v1048_v32, %v996_v42 }
 0x1bd   : > { %v1090_v49 = vadd.f32 %v1834_v1, %v1070_v44 }
 0x1bf   : > { %v1106_v52 = vmax.f32 %v1090_v49, 0.0 }
 0x1c0   : > { %v976_v45 = vpop.f32.mrf.mxu1 }
 0x1c1   : > { %v997_v46 = vadd.f32 %v976_v45, %v919_v19 }
 0x1c3   : > { %v1071_v50 = vadd.f32 %v1050_v43, %v997_v46 }
 0x1c5   : > { %v1091_v51 = vadd.f32 %v1834_v1, %v1071_v50 }
 0x1c7   : > { %v1107_v53 = vmax.f32 %v1091_v51, 0.0 }
 0x1c8   : > { %v979_v55 = vpop.f32.mrf.mxu1 }
 0x1c9   : > { %v1116_v56 = vpack.c.bf16 %v1107_v53, %v1106_v52  ;;  %v998_v57 = vadd.f32 %v979_v55, %v922_v34 }
 0x1cb   : > { %1457 = vmatmul.msk.bf16.gmra.mxu2 %vm478_vm0, %v1116_v56  ;;  %v1072_v61 = vadd.f32 %v1053_v54, %v998_v57 }
 0x1cd   : > { %v1092_v2 = vadd.f32 %v1834_v1, %v1072_v61 }
 0x1cf   : > { %v1108_v5 = vmax.f32 %v1092_v2, 0.0 }
 0x1d0   : > { %v981_v62 = vpop.f32.mrf.mxu1 }
 0x1d1   : > { %v999_v63 = vadd.f32 %v981_v62, %v924_v60 }
 0x1d3   : > { %v1073_v3 = vadd.f32 %v1055_v0, %v999_v63 }
 0x1d5   : > { %v1093_v4 = vadd.f32 %v1834_v1, %v1073_v3 }
 0x1d7   : > { %v1109_v6 = vmax.f32 %v1093_v4, 0.0 }
 0x1d9   : > { %v1117_v7 = vpack.c.bf16 %v1109_v6, %v1108_v5 }
 0x1db   : > { %1458 = vmatmul.msk.bf16.gmra.mxu2 %vm478_vm0, %v1117_v7 }
 0x1ee   : > { %v1163_v21 = vpop.f32.mrf.mxu2 }
 0x1ef   : > { %v1164_v9 = vadd.f32 %v1863_v8, %v1163_v21 }
 0x1f1   : > { %v1203_v10 = vmax.f32 %v1164_v9, 0.0 }
 0x1f3   : > { %v1219_v1 = vpack.c.bf16 %v1203_v10, %v1203_v10 }
 0x1f5   : > { %1236 = vst.msk [vmem:[%s1871_s28] sm:$0xf] %vm1235_vm14, %v1219_v1 }
 0x1f6   : > { %v1165_v11 = vpop.f32.mrf.mxu2 }
 0x1f7   : > { %v1166_v12 = vadd.f32 %v1863_v8, %v1165_v11 }
 0x1f9   : > { %v1204_v13 = vmax.f32 %v1166_v12, 0.0 }
 0x1fb   : > { %v1220_v14 = vpack.c.bf16 %v1204_v13, %v1204_v13 }
 0x1fd   : > { %1237 = vst.msk [vmem:[%s1871_s28 + $0x4] sm:$0xf] %vm1235_vm14, %v1220_v14 }
 0x1fe   : > { %v1168_v15 = vpop.f32.mrf.mxu2 }
 0x1ff   : > { %v1169_v16 = vadd.f32 %v1863_v8, %v1168_v15 }
 0x201   : > { %v1205_v17 = vmax.f32 %v1169_v16, 0.0 }
 0x203   : > { %v1221_v18 = vpack.c.bf16 %v1205_v17, %v1205_v17 }
 0x205   : > { %1238 = vst.msk [vmem:[%s1871_s28 + $0x8] sm:$0xf] %vm1235_vm14, %v1221_v18 }
 0x206   : > { %v1170_v20 = vpop.f32.mrf.mxu2 }
 0x207   : > { %v1171_v22 = vadd.f32 %v1863_v8, %v1170_v20 }
 0x209   : > { %v1206_v23 = vmax.f32 %v1171_v22, 0.0 }
 0x20b   : > { %v1222_v24 = vpack.c.bf16 %v1206_v23, %v1206_v23 }
 0x20d   : > { %1239 = vst.msk [vmem:[%s1871_s28 + $0xc] sm:$0xf] %vm1235_vm14, %v1222_v24 }
 0x20e   : > { %v1173_v25 = vpop.f32.mrf.mxu2 }
 0x20f   : > { %v1174_v26 = vadd.f32 %v1863_v8, %v1173_v25 }
 0x211   : > { %v1207_v27 = vmax.f32 %v1174_v26, 0.0 }
 0x213   : > { %v1223_v28 = vpack.c.bf16 %v1207_v27, %v1207_v27 }
 0x215   : > { %1240 = vst.msk [vmem:[%s1871_s28 + $0x10] sm:$0xf] %vm1235_vm14, %v1223_v28 }
 0x216   : > { %v1175_v29 = vpop.f32.mrf.mxu2 }
 0x217   : > { %v1176_v30 = vadd.f32 %v1863_v8, %v1175_v29 }
 0x219   : > { %v1208_v31 = vmax.f32 %v1176_v30, 0.0 }
 0x21b   : > { %v1224_v32 = vpack.c.bf16 %v1208_v31, %v1208_v31 }
 0x21d   : > { %1241 = vst.msk [vmem:[%s1871_s28 + $0x14] sm:$0xf] %vm1235_vm14, %v1224_v32 }
 0x21e   : > { %v1178_v33 = vpop.f32.mrf.mxu2 }
 0x21f   : > { %v1179_v35 = vadd.f32 %v1863_v8, %v1178_v33 }
 0x221   : > { %v1209_v36 = vmax.f32 %v1179_v35, 0.0 }
 0x223   : > { %v1225_v37 = vpack.c.bf16 %v1209_v36, %v1209_v36 }
 0x225   : > { %1242 = vst.msk [vmem:[%s1871_s28 + $0x18] sm:$0xf] %vm1235_vm14, %v1225_v37 }
 0x226   : > { %v1180_v38 = vpop.f32.mrf.mxu2 }
 0x227   : > { %v1181_v39 = vadd.f32 %v1863_v8, %v1180_v38 }
 0x229   : > { %v1210_v40 = vmax.f32 %v1181_v39, 0.0 }
 0x22b   : > { %v1226_v41 = vpack.c.bf16 %v1210_v40, %v1210_v40 }
 0x22d   : > { %1243 = vst.msk [vmem:[%s1871_s28 + $0x1c] sm:$0xf] %vm1235_vm14, %v1226_v41 }
 0x22e   : > { %v1183_v42 = vpop.f32.mrf.mxu2 }
 0x22f   : > { %v1184_v43 = vadd.f32 %v1863_v8, %v1183_v42 }
 0x231   : > { %v1211_v19 = vmax.f32 %v1184_v43, 0.0 }
 0x233   : > { %v1227_v44 = vpack.c.bf16 %v1211_v19, %v1211_v19 }
 0x235   : > { %1244 = vst.msk [vmem:[%s1871_s28 + $0x20] sm:$0xf] %vm1235_vm14, %v1227_v44 }
 0x236   : > { %v1185_v45 = vpop.f32.mrf.mxu2 }
 0x237   : > { %v1186_v46 = vadd.f32 %v1863_v8, %v1185_v45 }
 0x239   : > { %v1212_v47 = vmax.f32 %v1186_v46, 0.0 }
 0x23b   : > { %v1228_v48 = vpack.c.bf16 %v1212_v47, %v1212_v47 }
 0x23d   : > { %1245 = vst.msk [vmem:[%s1871_s28 + $0x24] sm:$0xf] %vm1235_vm14, %v1228_v48 }
 0x23e   : > { %v1188_v49 = vpop.f32.mrf.mxu2 }
 0x23f   : > { %v1189_v50 = vadd.f32 %v1863_v8, %v1188_v49 }
 0x241   : > { %v1213_v51 = vmax.f32 %v1189_v50, 0.0 }
 0x243   : > { %v1229_v52 = vpack.c.bf16 %v1213_v51, %v1213_v51 }
 0x245   : > { %1246 = vst.msk [vmem:[%s1871_s28 + $0x28] sm:$0xf] %vm1235_vm14, %v1229_v52 }
 0x246   : > { %v1190_v53 = vpop.f32.mrf.mxu2 }
 0x247   : > { %v1191_v54 = vadd.f32 %v1863_v8, %v1190_v53 }
 0x249   : > { %v1214_v55 = vmax.f32 %v1191_v54, 0.0 }
 0x24b   : > { %v1230_v34 = vpack.c.bf16 %v1214_v55, %v1214_v55 }
 0x24d   : > { %1247 = vst.msk [vmem:[%s1871_s28 + $0x2c] sm:$0xf] %vm1235_vm14, %v1230_v34 }
 0x24e   : > { %v1193_v56 = vpop.f32.mrf.mxu2 }
 0x24f   : > { %v1194_v57 = vadd.f32 %v1863_v8, %v1193_v56 }
 0x251   : > { %v1215_v58 = vmax.f32 %v1194_v57, 0.0 }
 0x253   : > { %v1231_v59 = vpack.c.bf16 %v1215_v58, %v1215_v58 }
 0x255   : > { %1248 = vst.msk [vmem:[%s1871_s28 + $0x30] sm:$0xf] %vm1235_vm14, %v1231_v59 }
 0x256   : > { %v1195_v60 = vpop.f32.mrf.mxu2 }
 0x257   : > { %v1196_v61 = vadd.f32 %v1863_v8, %v1195_v60 }
 0x259   : > { %v1216_v62 = vmax.f32 %v1196_v61, 0.0 }
 0x25b   : > { %v1232_v63 = vpack.c.bf16 %v1216_v62, %v1216_v62 }
 0x25d   : > { %1249 = vst.msk [vmem:[%s1871_s28 + $0x34] sm:$0xf] %vm1235_vm14, %v1232_v63 }
 0x25e   : > { %v1198_v0 = vpop.f32.mrf.mxu2 }
 0x25f   : > { %v1199_v2 = vadd.f32 %v1863_v8, %v1198_v0 }
 0x261   : > { %v1217_v3 = vmax.f32 %v1199_v2, 0.0 }
 0x263   : > { %v1233_v4 = vpack.c.bf16 %v1217_v3, %v1217_v3 }
 0x265   : > { %1250 = vst.msk [vmem:[%s1871_s28 + $0x38] sm:$0xf] %vm1235_vm14, %v1233_v4 }
 0x266   : > { %v1200_v5 = vpop.f32.mrf.mxu2 }
 0x267   : > { %v1201_v6 = vadd.f32 %v1863_v8, %v1200_v5 }
 0x269   : > { %v1218_v7 = vmax.f32 %v1201_v6, 0.0 }
 0x26b   : > { %v1234_v21 = vpack.c.bf16 %v1218_v7, %v1218_v7 }
 0x26d   : > { %1251 = vst.msk [vmem:[%s1871_s28 + $0x3c] sm:$0xf] %vm1235_vm14, %v1234_v21 }
 0x26e PF: > { %s18_s9 = sadd.s32 1, %s1564_s9   ;;  %s1946_s27 = smov %s1556_s29 }
 0x26f   : > { %p15_p9 = scmp.ge.s32.totalorder %s18_s9, 6   ;;  %s1947_s28 = smov %s1560_s30 }
 0x270   : > { %s1948_s29 = smov %s1951_s10  ;;  %s1949_s30 = smov %s1955_s11 }
 0x271   :  { %17 = sbr.rel (!%p15_p9) target bundleno = 3 (0x3), region = 88 }

</bundles_post_ra>
